<compile_context>
chip_gen: v6e
topology: v6e:2x2x1
jax: 0.10.0
libtpu: 0.0.40
codegen_flags: <defaults>
</compile_context>

<pallas_src>
import jax
import jax.numpy as jnp
from jax.experimental import pallas as pl
from jax.experimental.pallas import tpu as pltpu


def _center_loss_kernel(labels_smem_ref, labels_row_ref, x_ref, centers_ref,
                        lr_ref, loss_ref, new_centers_ref, diff_ref):
    B, D = x_ref.shape
    C = centers_ref.shape[0]

    # ---- Gather (index_select) via SMEM-scalar driven dynamic row reads. ----
    # diff[i, :] = centers[labels[i], :] - x[i, :]
    for i in range(B):  # B is tiny; static unroll
        lab = labels_smem_ref[i]
        diff_ref[pl.ds(i, 1), :] = (
            centers_ref[pl.ds(lab, 1), :] - x_ref[pl.ds(i, 1), :]
        )

    diff = diff_ref[...]                                  # (B, D) f32

    # ---- loss = sum((x - c_y)^2) / 2 / B  with 1/(2B) folded to a constant.
    loss_ref[0, 0] = jnp.sum(diff * diff) * jnp.float32(0.5 / B)

    # ---- Pre-transposed one-hot (C, B): no transpose needed downstream. ----
    iota_c = jax.lax.broadcasted_iota(jnp.int32, (C, B), 0)
    one_hot_t = (iota_c == labels_row_ref[...]).astype(jnp.float32)   # (C, B)

    # counts[c] = 1 + #(labels == c): lane reduction, no MXU / ones matmul.
    counts = 1.0 + jnp.sum(one_hot_t, axis=1, keepdims=True)          # (C, 1)

    # grad_centers[c] = sum_{i: labels[i]==c} diff[i]: one MXU matmul.
    grad_centers = jnp.dot(one_hot_t, diff, preferred_element_type=jnp.float32)

    # Fuse lr and 1/counts into a (C,1) per-class scale (exact reciprocal).
    inv_counts = 1.0 / counts
    scale = lr_ref[0] * inv_counts                                    # (C, 1)
    new_centers_ref[...] = centers_ref[...] - grad_centers * scale


def center_loss(x, labels, centers, lr):
    """Returns (loss scalar f32, updated_centers[C, D] f32)."""
    B, D = x.shape
    C, _ = centers.shape
    labels_i32 = labels.astype(jnp.int32)
    labels_smem = labels_i32.reshape(B)        # SMEM scalars for the gather
    labels_row = labels_i32.reshape(1, B)      # VMEM row for the (C,B) one-hot
    lr_arr = jnp.asarray(lr, jnp.float32).reshape(1)

    loss, new_centers = pl.pallas_call(
        _center_loss_kernel,
        out_shape=(
            jax.ShapeDtypeStruct((1, 1), jnp.float32),
            jax.ShapeDtypeStruct((C, D), jnp.float32),
        ),
        in_specs=[
            pl.BlockSpec(memory_space=pltpu.MemorySpace.SMEM),   # labels (B,) int32
            pl.BlockSpec(memory_space=pltpu.MemorySpace.VMEM),   # labels (1,B) int32
            pl.BlockSpec(memory_space=pltpu.MemorySpace.VMEM),   # x (B,D)
            pl.BlockSpec(memory_space=pltpu.MemorySpace.VMEM),   # centers (C,D)
            pl.BlockSpec(memory_space=pltpu.MemorySpace.SMEM),   # lr (1,)
        ],
        out_specs=(
            pl.BlockSpec(memory_space=pltpu.MemorySpace.SMEM),   # loss (1,1)
            pl.BlockSpec(memory_space=pltpu.MemorySpace.VMEM),   # new_centers (C,D)
        ),
        scratch_shapes=[pltpu.VMEM((B, D), jnp.float32)],        # diff scratch
        input_output_aliases={3: 1},    # centers input aliases new_centers out
    )(labels_smem, labels_row, x, centers, lr_arr)
    return loss[0, 0], new_centers


def _reference(x, labels, centers, lr):
    B = x.shape[0]
    center_batch = centers[labels]
    diff = center_batch - x
    loss = jnp.sum((x - center_batch) ** 2) / 2.0 / B
    counts = jnp.ones((centers.shape[0],), jnp.float32).at[labels].add(
        jnp.ones((B,), jnp.float32))
    grad_centers = jnp.zeros_like(centers).at[labels].add(diff)
    grad_centers = grad_centers / counts[:, None]
    return loss, centers - lr * grad_centers


if __name__ == "__main__":
    num_classes, feat_dim, batch = 107, 256, 8

    key = jax.random.PRNGKey(0)
    k_centers, k_x, k_labels = jax.random.split(key, 3)

    # Deterministic parameter init (mirrors torch.randn init of nn.Parameter).
    centers = jax.random.normal(k_centers, (num_classes, feat_dim), jnp.float32)
    lr = jnp.float32(0.1)

    x = jax.random.normal(k_x, (batch, feat_dim), jnp.float32)
    labels = jax.random.randint(k_labels, (batch,), 0, num_classes, jnp.int32)

    # Reference first (pure jnp), then kernel.
    ref_loss, ref_centers = _reference(x, labels, centers, lr)

    loss, new_centers = center_loss(x, labels, centers, lr)
    jax.block_until_ready((loss, new_centers))

    assert jnp.allclose(loss, ref_loss, rtol=1e-5, atol=1e-5), (loss, ref_loss)
    assert jnp.allclose(new_centers, ref_centers, rtol=1e-5, atol=1e-5)

    print("KERNEL_OK")
</pallas_src>

<mosaic_0001>
module attributes {stable_mosaic.version = 11 : i64} {
  func.func @_center_loss_kernel(%arg0: memref<8xi32, #tpu.memory_space<smem>>, %arg1: memref<1x8xi32, #tpu.memory_space<vmem>>, %arg2: memref<8x256xf32, #tpu.memory_space<vmem>>, %arg3: memref<107x256xf32, #tpu.memory_space<vmem>>, %arg4: memref<1xf32, #tpu.memory_space<smem>>, %arg5: memref<1x1xf32, #tpu.memory_space<smem>>, %arg6: memref<107x256xf32, #tpu.memory_space<vmem>>, %arg7: memref<8x256xf32, #tpu.memory_space<vmem>>) attributes {dimension_semantics = [], scalar_prefetch = 0 : i64, scratch_operands = 1 : i64, tpu.core_type = #tpu.core_type<tc>} {
    %c0 = arith.constant 0 : index
    %0 = memref.load %arg0[%c0] : memref<8xi32, #tpu.memory_space<smem>>
    %1 = arith.index_cast %0 : i32 to index
    %c0_0 = arith.constant 0 : index
    %2 = vector.load %arg3[%1, %c0_0] : memref<107x256xf32, #tpu.memory_space<vmem>>, vector<1x256xf32>
    %c0_1 = arith.constant 0 : index
    %c0_2 = arith.constant 0 : index
    %3 = vector.load %arg2[%c0_1, %c0_2] : memref<8x256xf32, #tpu.memory_space<vmem>>, vector<1x256xf32>
    %4 = arith.subf %2, %3 : vector<1x256xf32>
    %c0_3 = arith.constant 0 : index
    %c0_4 = arith.constant 0 : index
    %5 = vector.load %arg7[%c0_3, %c0_4] : memref<8x256xf32, #tpu.memory_space<vmem>>, vector<1x256xf32>
    tpu.vector_store %arg7[%c0_3, %c0_4], %4 {strides = array<i32>} : memref<8x256xf32, #tpu.memory_space<vmem>>, vector<1x256xf32>,
    %c1 = arith.constant 1 : index
    %6 = memref.load %arg0[%c1] : memref<8xi32, #tpu.memory_space<smem>>
    %7 = arith.index_cast %6 : i32 to index
    %c0_5 = arith.constant 0 : index
    %8 = vector.load %arg3[%7, %c0_5] : memref<107x256xf32, #tpu.memory_space<vmem>>, vector<1x256xf32>
    %c1_6 = arith.constant 1 : index
    %c0_7 = arith.constant 0 : index
    %9 = vector.load %arg2[%c1_6, %c0_7] : memref<8x256xf32, #tpu.memory_space<vmem>>, vector<1x256xf32>
    %10 = arith.subf %8, %9 : vector<1x256xf32>
    %c1_8 = arith.constant 1 : index
    %c0_9 = arith.constant 0 : index
    %11 = vector.load %arg7[%c1_8, %c0_9] : memref<8x256xf32, #tpu.memory_space<vmem>>, vector<1x256xf32>
    tpu.vector_store %arg7[%c1_8, %c0_9], %10 {strides = array<i32>} : memref<8x256xf32, #tpu.memory_space<vmem>>, vector<1x256xf32>,
    %c2 = arith.constant 2 : index
    %12 = memref.load %arg0[%c2] : memref<8xi32, #tpu.memory_space<smem>>
    %13 = arith.index_cast %12 : i32 to index
    %c0_10 = arith.constant 0 : index
    %14 = vector.load %arg3[%13, %c0_10] : memref<107x256xf32, #tpu.memory_space<vmem>>, vector<1x256xf32>
    %c2_11 = arith.constant 2 : index
    %c0_12 = arith.constant 0 : index
    %15 = vector.load %arg2[%c2_11, %c0_12] : memref<8x256xf32, #tpu.memory_space<vmem>>, vector<1x256xf32>
    %16 = arith.subf %14, %15 : vector<1x256xf32>
    %c2_13 = arith.constant 2 : index
    %c0_14 = arith.constant 0 : index
    %17 = vector.load %arg7[%c2_13, %c0_14] : memref<8x256xf32, #tpu.memory_space<vmem>>, vector<1x256xf32>
    tpu.vector_store %arg7[%c2_13, %c0_14], %16 {strides = array<i32>} : memref<8x256xf32, #tpu.memory_space<vmem>>, vector<1x256xf32>,
    %c3 = arith.constant 3 : index
    %18 = memref.load %arg0[%c3] : memref<8xi32, #tpu.memory_space<smem>>
    %19 = arith.index_cast %18 : i32 to index
    %c0_15 = arith.constant 0 : index
    %20 = vector.load %arg3[%19, %c0_15] : memref<107x256xf32, #tpu.memory_space<vmem>>, vector<1x256xf32>
    %c3_16 = arith.constant 3 : index
    %c0_17 = arith.constant 0 : index
    %21 = vector.load %arg2[%c3_16, %c0_17] : memref<8x256xf32, #tpu.memory_space<vmem>>, vector<1x256xf32>
    %22 = arith.subf %20, %21 : vector<1x256xf32>
    %c3_18 = arith.constant 3 : index
    %c0_19 = arith.constant 0 : index
    %23 = vector.load %arg7[%c3_18, %c0_19] : memref<8x256xf32, #tpu.memory_space<vmem>>, vector<1x256xf32>
    tpu.vector_store %arg7[%c3_18, %c0_19], %22 {strides = array<i32>} : memref<8x256xf32, #tpu.memory_space<vmem>>, vector<1x256xf32>,
    %c4 = arith.constant 4 : index
    %24 = memref.load %arg0[%c4] : memref<8xi32, #tpu.memory_space<smem>>
    %25 = arith.index_cast %24 : i32 to index
    %c0_20 = arith.constant 0 : index
    %26 = vector.load %arg3[%25, %c0_20] : memref<107x256xf32, #tpu.memory_space<vmem>>, vector<1x256xf32>
    %c4_21 = arith.constant 4 : index
    %c0_22 = arith.constant 0 : index
    %27 = vector.load %arg2[%c4_21, %c0_22] : memref<8x256xf32, #tpu.memory_space<vmem>>, vector<1x256xf32>
    %28 = arith.subf %26, %27 : vector<1x256xf32>
    %c4_23 = arith.constant 4 : index
    %c0_24 = arith.constant 0 : index
    %29 = vector.load %arg7[%c4_23, %c0_24] : memref<8x256xf32, #tpu.memory_space<vmem>>, vector<1x256xf32>
    tpu.vector_store %arg7[%c4_23, %c0_24], %28 {strides = array<i32>} : memref<8x256xf32, #tpu.memory_space<vmem>>, vector<1x256xf32>,
    %c5 = arith.constant 5 : index
    %30 = memref.load %arg0[%c5] : memref<8xi32, #tpu.memory_space<smem>>
    %31 = arith.index_cast %30 : i32 to index
    %c0_25 = arith.constant 0 : index
    %32 = vector.load %arg3[%31, %c0_25] : memref<107x256xf32, #tpu.memory_space<vmem>>, vector<1x256xf32>
    %c5_26 = arith.constant 5 : index
    %c0_27 = arith.constant 0 : index
    %33 = vector.load %arg2[%c5_26, %c0_27] : memref<8x256xf32, #tpu.memory_space<vmem>>, vector<1x256xf32>
    %34 = arith.subf %32, %33 : vector<1x256xf32>
    %c5_28 = arith.constant 5 : index
    %c0_29 = arith.constant 0 : index
    %35 = vector.load %arg7[%c5_28, %c0_29] : memref<8x256xf32, #tpu.memory_space<vmem>>, vector<1x256xf32>
    tpu.vector_store %arg7[%c5_28, %c0_29], %34 {strides = array<i32>} : memref<8x256xf32, #tpu.memory_space<vmem>>, vector<1x256xf32>,
    %c6 = arith.constant 6 : index
    %36 = memref.load %arg0[%c6] : memref<8xi32, #tpu.memory_space<smem>>
    %37 = arith.index_cast %36 : i32 to index
    %c0_30 = arith.constant 0 : index
    %38 = vector.load %arg3[%37, %c0_30] : memref<107x256xf32, #tpu.memory_space<vmem>>, vector<1x256xf32>
    %c6_31 = arith.constant 6 : index
    %c0_32 = arith.constant 0 : index
    %39 = vector.load %arg2[%c6_31, %c0_32] : memref<8x256xf32, #tpu.memory_space<vmem>>, vector<1x256xf32>
    %40 = arith.subf %38, %39 : vector<1x256xf32>
    %c6_33 = arith.constant 6 : index
    %c0_34 = arith.constant 0 : index
    %41 = vector.load %arg7[%c6_33, %c0_34] : memref<8x256xf32, #tpu.memory_space<vmem>>, vector<1x256xf32>
    tpu.vector_store %arg7[%c6_33, %c0_34], %40 {strides = array<i32>} : memref<8x256xf32, #tpu.memory_space<vmem>>, vector<1x256xf32>,
    %c7 = arith.constant 7 : index
    %42 = memref.load %arg0[%c7] : memref<8xi32, #tpu.memory_space<smem>>
    %43 = arith.index_cast %42 : i32 to index
    %c0_35 = arith.constant 0 : index
    %44 = vector.load %arg3[%43, %c0_35] : memref<107x256xf32, #tpu.memory_space<vmem>>, vector<1x256xf32>
    %c7_36 = arith.constant 7 : index
    %c0_37 = arith.constant 0 : index
    %45 = vector.load %arg2[%c7_36, %c0_37] : memref<8x256xf32, #tpu.memory_space<vmem>>, vector<1x256xf32>
    %46 = arith.subf %44, %45 : vector<1x256xf32>
    %c7_38 = arith.constant 7 : index
    %c0_39 = arith.constant 0 : index
    %47 = vector.load %arg7[%c7_38, %c0_39] : memref<8x256xf32, #tpu.memory_space<vmem>>, vector<1x256xf32>
    tpu.vector_store %arg7[%c7_38, %c0_39], %46 {strides = array<i32>} : memref<8x256xf32, #tpu.memory_space<vmem>>, vector<1x256xf32>,
    %c0_40 = arith.constant 0 : index
    %c0_41 = arith.constant 0 : index
    %48 = vector.load %arg7[%c0_40, %c0_41] : memref<8x256xf32, #tpu.memory_space<vmem>>, vector<8x256xf32>
    %49 = arith.mulf %48, %48 : vector<8x256xf32>
    %50 = vector.shape_cast %49 : vector<8x256xf32> to vector<1x8x256xf32>
    %cst = arith.constant dense<0.000000e+00> : vector<1xf32>
    %51 = vector.multi_reduction <add>, %50, %cst [1, 2] : vector<1x8x256xf32> to vector<1xf32>
    %52 = vector.shape_cast %51 : vector<1xf32> to vector<1x1x1xf32>
    %53 = vector.extract %52[0, 0, 0] : f32 from vector<1x1x1xf32>
    %cst_42 = arith.constant 6.250000e-02 : f32
    %54 = arith.mulf %53, %cst_42 : f32
    %c0_43 = arith.constant 0 : index
    %c0_44 = arith.constant 0 : index
    %55 = memref.load %arg5[%c0_43, %c0_44] : memref<1x1xf32, #tpu.memory_space<smem>>
    memref.store %54, %arg5[%c0_43, %c0_44] : memref<1x1xf32, #tpu.memory_space<smem>>
    %56 = tpu.iota {dimensions = array<i32: 0>} : vector<107x8xi32>
    %c0_45 = arith.constant 0 : index
    %c0_46 = arith.constant 0 : index
    %57 = vector.load %arg1[%c0_45, %c0_46] : memref<1x8xi32, #tpu.memory_space<vmem>>, vector<1x8xi32>
    %58 = vector.broadcast %57 : vector<1x8xi32> to vector<107x8xi32>
    %59 = arith.cmpi eq, %56, %58 : vector<107x8xi32>
    %60 = arith.extui %59 : vector<107x8xi1> to vector<107x8xi32>
    %61 = arith.sitofp %60 : vector<107x8xi32> to vector<107x8xf32>
    %cst_47 = arith.constant dense<0.000000e+00> : vector<107xf32>
    %62 = vector.multi_reduction <add>, %61, %cst_47 [1] : vector<107x8xf32> to vector<107xf32>
    %63 = vector.shape_cast %62 : vector<107xf32> to vector<107x1xf32>
    %cst_48 = arith.constant 1.000000e+00 : f32
    %64 = vector.broadcast %cst_48 : f32 to vector<107x1xf32>
    %65 = arith.addf %64, %63 : vector<107x1xf32>
    %cst_49 = arith.constant dense<0.000000e+00> : vector<107x256xf32>
    %66 = tpu.matmul %61, %48, %cst_49 {dimension_numbers = #tpu.dot_dimension_numbers<[1], [0], [0], [1], [0, 0, 1, 1], [], []>} : vector<107x8xf32>, vector<8x256xf32>, vector<107x256xf32> -> vector<107x256xf32>
    %cst_50 = arith.constant 1.000000e+00 : f32
    %67 = vector.broadcast %cst_50 : f32 to vector<107x1xf32>
    %68 = arith.divf %67, %65 : vector<107x1xf32>
    %c0_51 = arith.constant 0 : index
    %69 = memref.load %arg4[%c0_51] : memref<1xf32, #tpu.memory_space<smem>>
    %70 = vector.broadcast %69 : f32 to vector<107x1xf32>
    %71 = arith.mulf %70, %68 : vector<107x1xf32>
    %c0_52 = arith.constant 0 : index
    %c0_53 = arith.constant 0 : index
    %72 = vector.load %arg3[%c0_52, %c0_53] : memref<107x256xf32, #tpu.memory_space<vmem>>, vector<107x256xf32>
    %73 = vector.broadcast %71 : vector<107x1xf32> to vector<107x256xf32>
    %74 = arith.mulf %66, %73 : vector<107x256xf32>
    %75 = arith.subf %72, %74 : vector<107x256xf32>
    %c0_54 = arith.constant 0 : index
    %c0_55 = arith.constant 0 : index
    %76 = vector.load %arg6[%c0_54, %c0_55] : memref<107x256xf32, #tpu.memory_space<vmem>>, vector<107x256xf32>
    tpu.vector_store %arg6[%c0_54, %c0_55], %75 {strides = array<i32>} : memref<107x256xf32, #tpu.memory_space<vmem>>, vector<107x256xf32>,
    return
  }
}

</mosaic_0001>

<bundles_post_ra>
// kernel: tpu_custom_call.1
= control target key start
LH: loop header
LB: loop body
LE: loop exit
PB: predicated region body
PF: predicated region fallthrough
CT: control target
= control target key end

     0   :  { %13 = vsyncpa [#allocation8], 0  ;;  %s1148_s0 = inlined_call_operand.vmem [shape: s32[8], index: 0, kind: input, shape index: {}]   ;;  %s1149_s1 = inlined_call_operand.vmem [shape: s32[1,8], index: 1, kind: input, shape index: {}]   ;;  %s1150_s2 = inlined_call_operand.vmem [shape: f32[8,256], index: 2, kind: input, shape index: {}]   ;;  %s1151_s3 = inlined_call_operand.hbm [shape: f32[107,256], index: 3, kind: input, shape index: {}, may-alias: {3,6}]   ;;  %s1152_s4 = inlined_call_operand.<no memory space> [shape: f32[1], index: 4, kind: input, shape index: {}]   ;;  %s1153_s5 = inlined_call_operand.hbm [shape: f32[1,1], index: 5, kind: output, shape index: {0}]   ;;  %s1154_s6 = inlined_call_operand.hbm [shape: f32[107,256], index: 6, kind: output, shape index: {1}, may-alias: {3,6}]  }
   0x1   :  { %14 = vsyncpa [#allocation5], 0 }
   0x2   :  { %15 = vsyncpa [#allocation7], 0 }
   0x3   :  { %16 = vsyncpa [#allocation6], 0  ;;  %s23_s23 = sshll.u32 %s1148_s0, 4  ;;  %s24_s23 = int_to_ptr.vmem [resolvable:$true] %s23_s23 }
   0x4   :  { %s827_s24 = scalar_lea.vmem %s24_s23, 16  ;;  %p832_p1 = scmp.lt.s32.totalorder %s24_s23, %s24_s23 }
   0x5   :  { %p828_p0 = scmp.ne.s32.totalorder %s24_s23, %s827_s24  ;;  %p833_p2 = scmp.lt.s32.totalorder %s827_s24, %s827_s24 }
   0x7   :  { %p834_p3 = por %p833_p2, %p832_p1 }
   0x9   :  { %p835_p4 = pnand %p834_p3, %p828_p0 }
   0xb   :  { %838 = shalt.err (!%p835_p4)
}
   0xc   :  { %s895_s25 = smov [#allocation4]   ;;  %s896_s26 = smov [#allocation9]  }
   0xd   :  { %26 = dma.vmem_to_smem %s24_s23, 16, %s895_s25, [#allocation8]  }
   0xe   :  { %s36_s27 = sshll.u32 %s896_s26, 4  ;;  %s37_s27 = int_to_ptr.vmem [resolvable:$true] %s36_s27 }
   0xf   :  { %s847_s28 = scalar_lea.vmem %s37_s27, 3584  ;;  %p852_p6 = scmp.lt.s32.totalorder %s37_s27, %s37_s27 }
  0x10   :  { %p848_p5 = scmp.ne.s32.totalorder %s37_s27, %s847_s28  ;;  %p853_p7 = scmp.lt.s32.totalorder %s847_s28, %s847_s28 }
  0x12   :  { %p854_p8 = por %p853_p7, %p852_p6 }
  0x14   :  { %p855_p9 = pnand %p854_p8, %p848_p5 }
  0x16   :  { %858 = shalt.err (!%p855_p9)
}
  0x17   :  { %s897_s0 = smov 256   ;;  %s898_s29 = smov 16  }
  0x18   :  { %42 = dma.hbm_to_vmem [thread:$0]  %s1151_s3, 3584, %s37_s27, [#allocation5], %s897_s0, %s897_s0, %s898_s29  }
  0x19   :  { %887 = dma.done.wait [#allocation8], 16  }
  0x1a   :  { %888 = vsyncadd [#allocation8], 4294967280 }
  0x1b   :  { %889 = dma.done.wait [#allocation5], 3584  }
  0x1c   :  { %890 = vsyncadd [#allocation5], 4294963712 }
  0x1d   :  { %51 = sfence }
  0x1e   :  { %s52_s8 = sld [smem:[#allocation4]]  ;;  %v899_v0 = vmov 0.0   ;;  %v64_v1 = vlaneseq  ;;  %v62_v4 = vld [vmem:[%s1150_s2] ss:$8 sm:$0x3]  ;;  %vm261_vm2 = vcmask 64512  }
  0x1f   :  { %s723_s9 = sld [smem:[#allocation4 + $0x1]]  ;;  %425 = vmatprep.mubr.f32.mxu0 %v899_v0  ;;  %467 = vmatprep.mubr.f32.mxu1 %v899_v0  ;;  %v726_v6 = vld [vmem:[%s1150_s2 + $0x1] ss:$8 sm:$0x3]  ;;  %v973_v8 = vld [vmem:[%s1149_s1] ss:$0 sm:$0xff] }
  0x20   :  { %s948_s10 = sld [smem:[#allocation4 + $0x2]]  ;;  %v956_v2 = vshrl.u32 %v64_v1, 7  ;;  %vm962_vm0 = vcmp.lt.s32.totalorder %v64_v1, 256  ;;  %v730_v13 = vld [vmem:[%s1150_s2 + $0x2] ss:$8 sm:$0x3] }
  0x21   :  { %s950_s11 = sld [smem:[#allocation4 + $0x3]]  ;;  %v734_v15 = vld [vmem:[%s1150_s2 + $0x3] ss:$8 sm:$0x3] }
  0x22   :  { %s952_s12 = sld [smem:[#allocation4 + $0x4]]  ;;  %v201_v3 = vadd.s32 8, %v956_v2  ;;  %v202_v10 = vadd.s32 16, %v956_v2  ;;  %v204_v14 = vadd.s32 32, %v956_v2  ;;  %v206_v21 = vadd.s32 48, %v956_v2 }
  0x23   :  { %s954_s3 = sld [smem:[#allocation4 + $0x5]]  ;;  %v738_v23 = vld [vmem:[%s1150_s2 + $0x4] ss:$8 sm:$0x3]  ;;  %v208_v30 = vadd.s32 64, %v956_v2  ;;  %v210_v35 = vadd.s32 80, %v956_v2  ;;  %vm219_vm9 = vcmp.eq.s32.totalorder %v956_v2, %v973_v8 }
  0x24   :  { %s53_s13 = sshra.s32 %s52_s8, 3  ;;  %s56_s14 = sand.u32 7, %s52_s8  ;;  %vm220_vm1 = vcmp.eq.s32.totalorder %v201_v3, %v973_v8  ;;  %vm221_vm3 = vcmp.eq.s32.totalorder %v202_v10, %v973_v8  ;;  %vm223_vm4 = vcmp.eq.s32.totalorder %v204_v14, %v973_v8  ;;  %v742_v25 = vld [vmem:[%s1150_s2 + $0x5] ss:$8 sm:$0x3]  ;;  %vm225_vm5 = vcmp.eq.s32.totalorder %v206_v21, %v973_v8 }
  0x25   :  { %s780_s15 = sshll.u32 %s53_s13, 4  ;;  %s71_s16 = sshra.s32 %s723_s9, 3  ;;  %v990_v16 = vsel %vm220_vm1, 1.0, %v899_v0  ;;  %v1011_v24 = vsel %vm221_vm3, 1.0, %v899_v0  ;;  %v1023_v28 = vsel %vm223_vm4, 1.0, %v899_v0  ;;  %v1034_v34 = vsel %vm225_vm5, 1.0, %v899_v0 }
  0x26   :  { %s59_s17 = sadd.s32 %s780_s15, %s56_s14  ;;  %s74_s20 = sand.u32 7, %s723_s9  ;;  %v265_v18 = vsel %vm261_vm2, %v990_v16, 0.0  ;;  %v268_v26 = vsel %vm261_vm2, %v1011_v24, 0.0  ;;  %v274_v31 = vsel %vm261_vm2, %v1023_v28, 0.0  ;;  %vm227_vm6 = vcmp.eq.s32.totalorder %v208_v30, %v973_v8 }
  0x27   :  { %s781_s21 = sshll.u32 %s71_s16, 4  ;;  %s60_s24 = scalar_lea.vmem [#allocation9], %s59_s17  ;;  %266 = vadd.xlane.f32.xlu1 %v265_v18  ;;  %v280_v36 = vsel %vm261_vm2, %v1034_v34, 0.0  ;;  %v746_v37 = vld [vmem:[%s1150_s2 + $0x6] ss:$8 sm:$0x3]  ;;  %vm229_vm7 = vcmp.eq.s32.totalorder %v210_v35, %v973_v8 }
  0x28   :  { %v61_v7 = vld [vmem:[%s60_s24] ss:$8 sm:$0x3]  ;;  %s77_s25 = sadd.s32 %s781_s21, %s74_s20  ;;  %s87_s26 = sshra.s32 %s948_s10, 3  ;;  %v760_v38 = vsel %vm227_vm6, 1.0, %v899_v0  ;;  %v212_v39 = vadd.s32 96, %v956_v2 }
  0x29   :  { %v63_v9 = vsub.f32 %v61_v7, %v62_v4  ;;  %s90_s30 = sand.u32 7, %s948_s10  ;;  %s78_s7 = scalar_lea.vmem [#allocation9], %s77_s25  ;;  %v286_v40 = vsel %vm261_vm2, %v760_v38, 0.0  ;;  %v750_v42 = vld [vmem:[%s1150_s2 + $0x7] ss:$8 sm:$0x3] }
  0x2a   :  { %v79_v11 = vld [vmem:[%s78_s7] ss:$8 sm:$0x3]  ;;  %s782_s8 = sshll.u32 %s87_s26, 4  ;;  %s103_s9 = sshra.s32 %s950_s11, 3  ;;  %v762_v45 = vsel %vm229_vm7, 1.0, %v899_v0  ;;  %vm231_vm8 = vcmp.eq.s32.totalorder %v212_v39, %v973_v8 }
  0x2b   :  { %68 = vst.msk [vmem:[#allocation2] ss:$8 sm:$0x3] %vm962_vm0, %v63_v9  ;;  %v82_v12 = vsub.f32 %v79_v11, %v726_v6  ;;  %s93_s13 = sadd.s32 %s782_s8, %s90_s30  ;;  %s106_s1 = sand.u32 7, %s950_s11  ;;  %269 = vadd.xlane.f32.xlu1 %v268_v26  ;;  %v292_v47 = vsel %vm261_vm2, %v762_v45, 0.0  ;;  %v207_v48 = vadd.s32 56, %v956_v2 }
  0x2c   :  { %s783_s10 = sshll.u32 %s103_s9, 4  ;;  %s94_s18 = scalar_lea.vmem [#allocation9], %s93_s13  ;;  %v764_v49 = vsel %vm231_vm8, 1.0, %v899_v0  ;;  %v752_v53 = vsel %vm219_vm9, 1.0, %v899_v0  ;;  %v209_v55 = vadd.s32 72, %v956_v2  ;;  %v203_v58 = vadd.s32 24, %v956_v2 }
  0x2d   :  { %84 = vst.msk [vmem:[#allocation2 + $0x1] ss:$8 sm:$0x3] %vm962_vm0, %v82_v12  ;;  %v95_v17 = vld [vmem:[%s94_s18] ss:$8 sm:$0x3]  ;;  %s109_s19 = sadd.s32 %s783_s10, %s106_s1  ;;  %vm226_vm10 = vcmp.eq.s32.totalorder %v207_v48, %v973_v8 }
  0x2e   :  { %s119_s20 = sshra.s32 %s952_s12, 3  ;;  %v98_v19 = vsub.f32 %v95_v17, %v730_v13  ;;  %s122_s11 = sand.u32 7, %s952_s12  ;;  %v298_v50 = vsel %vm261_vm2, %v764_v49, 0.0  ;;  %v759_v54 = vsel %vm226_vm10, 1.0, %v899_v0  ;;  %vm228_vm11 = vcmp.eq.s32.totalorder %v209_v55, %v973_v8 }
  0x2f   :  { %s110_s21 = scalar_lea.vmem [#allocation9], %s109_s19  ;;  %s784_s22 = sshll.u32 %s119_s20, 4  ;;  %275 = vadd.xlane.f32.xlu1 %v274_v31  ;;  %vm222_vm12 = vcmp.eq.s32.totalorder %v203_v58, %v973_v8  ;;  %v205_v60 = vadd.s32 40, %v956_v2  ;;  %v262_v61 = vsel %vm261_vm2, %v752_v53, 0.0  ;;  %v761_v62 = vsel %vm228_vm11, 1.0, %v899_v0 }
  0x30   :  { %v111_v20 = vld [vmem:[%s110_s21] ss:$8 sm:$0x3]  ;;  %s135_s23 = sshra.s32 %s954_s3, 3  ;;  %s125_s24 = sadd.s32 %s784_s22, %s122_s11  ;;  %v755_v63 = vsel %vm222_vm12, 1.0, %v899_v0  ;;  %v211_v1 = vadd.s32 88, %v956_v2 }
  0x31   :  { %100 = vst.msk [vmem:[#allocation2 + $0x2] ss:$8 sm:$0x3] %vm962_vm0, %v98_v19  ;;  %v114_v22 = vsub.f32 %v111_v20, %v734_v15  ;;  %s138_s27 = sand.u32 7, %s954_s3  ;;  %s785_s12 = sshll.u32 %s135_s23, 4  ;;  %vm224_vm13 = vcmp.eq.s32.totalorder %v205_v60, %v973_v8  ;;  %v271_v3 = vsel %vm261_vm2, %v755_v63, 0.0 }
  0x32   :  { %s126_s7 = scalar_lea.vmem [#allocation9], %s125_s24  ;;  %s141_s8 = sadd.s32 %s785_s12, %s138_s27  ;;  %vm230_vm14 = vcmp.eq.s32.totalorder %v211_v1, %v973_v8  ;;  %v757_v4 = vsel %vm224_vm13, 1.0, %v899_v0  ;;  %v213_v7 = vadd.s32 104, %v956_v2  ;;  %v283_v9 = vsel %vm261_vm2, %v759_v54, 0.0  ;;  %v569_v1 = vld [vmem:[#allocation9 + $0x78] sm:$0xff] }
  0x33   :  { %116 = vst.msk [vmem:[#allocation2 + $0x3] ss:$8 sm:$0x3] %vm962_vm0, %v114_v22  ;;  %v127_v27 = vld [vmem:[%s126_s7] ss:$8 sm:$0x3]  ;;  %281 = vadd.xlane.f32.xlu1 %v280_v36 }
  0x34   :  { %s743_s3 = sld [smem:[#allocation4 + $0x6]]  ;;  %v130_v29 = vsub.f32 %v127_v27, %v738_v23  ;;  %s142_s13 = scalar_lea.vmem [#allocation9], %s141_s8  ;;  %v277_v5 = vsel %vm261_vm2, %v757_v4, 0.0  ;;  %v763_v6 = vsel %vm230_vm14, 1.0, %v899_v0  ;;  %vm232_vm15 = vcmp.eq.s32.totalorder %v213_v7, %v973_v8 }
  0x35   :  { %s1025_s9 = sld [smem:[#allocation4 + $0x7]]  ;;  %v143_v32 = vld [vmem:[%s142_s13] ss:$8 sm:$0x3]  ;;  %v289_v10 = vsel %vm261_vm2, %v761_v62, 0.0  ;;  %v765_v2 = vsel %vm232_vm15, 1.0, %v899_v0 }
  0x36   :  { %132 = vst.msk [vmem:[#allocation2 + $0x4] ss:$8 sm:$0x3] %vm962_vm0, %v130_v29  ;;  %v146_v33 = vsub.f32 %v143_v32, %v742_v25  ;;  %v295_v11 = vsel %vm261_vm2, %v763_v6, 0.0  ;;  %s900_s27 = smov [#allocation10]  }
  0x37   :  { %287 = vadd.xlane.f32.xlu1 %v286_v40 }
  0x38   :  { %148 = vst.msk [vmem:[#allocation2 + $0x5] ss:$8 sm:$0x3] %vm962_vm0, %v146_v33 }
  0x3a   :  { %s151_s14 = sshra.s32 %s743_s3, 3  ;;  %s154_s15 = sand.u32 7, %s743_s3 }
  0x3b   :  { %s786_s1 = sshll.u32 %s151_s14, 4  ;;  %s167_s10 = sshra.s32 %s1025_s9, 3  ;;  %293 = vadd.xlane.f32.xlu1 %v292_v47 }
  0x3c   :  { %s157_s16 = sadd.s32 %s786_s1, %s154_s15  ;;  %s170_s19 = sand.u32 7, %s1025_s9 }
  0x3d   :  { %s787_s20 = sshll.u32 %s167_s10, 4  ;;  %s158_s11 = scalar_lea.vmem [#allocation9], %s157_s16 }
  0x3e   :  { %v159_v41 = vld [vmem:[%s158_s11] ss:$8 sm:$0x3]  ;;  %s173_s21 = sadd.s32 %s787_s20, %s170_s19 }
  0x3f   :  { %v162_v43 = vsub.f32 %v159_v41, %v746_v37  ;;  %s174_s24 = scalar_lea.vmem [#allocation9], %s173_s21  ;;  %299 = vadd.xlane.f32.xlu1 %v298_v50 }
  0x40   :  { %v175_v44 = vld [vmem:[%s174_s24] ss:$8 sm:$0x3] }
  0x41   :  { %164 = vst.msk [vmem:[#allocation2 + $0x6] ss:$8 sm:$0x3] %vm962_vm0, %v162_v43  ;;  %v178_v46 = vsub.f32 %v175_v44, %v750_v42  ;;  %v1123_v43 = vstv %s1152_s4 }
  0x43   :  { %180 = vst.msk [vmem:[#allocation2 + $0x7] ss:$8 sm:$0x3] %vm962_vm0, %v178_v46  ;;  %vm301_vm0 = vcmask 59392  }
  0x44   :  { %v302_v8 = vsel %vm301_vm0, %v765_v2, 0.0 }
  0x4a   :  { %v183_v51 = vld [vmem:[#allocation2 + $0x8] sm:$0xff]  ;;  %v182_v52 = vld [vmem:[#allocation2] sm:$0xff] }
  0x4b   :  { %391 = vmatprep.subr.mxu0 %v183_v51  ;;  %788 = vmatprep.subr.mxu1 %v183_v51  ;;  %v184_v56 = vmul.f32 %v182_v52, %v182_v52  ;;  %v185_v57 = vmul.f32 %v183_v51, %v183_v51 }
  0x4c   :  { %392 = vmatpush1.msra.mxu0 %v182_v52  ;;  %789 = vmatpush1.msra.mxu1 %v182_v52  ;;  %v554_v52 = vld [vmem:[#allocation9] sm:$0xff] }
  0x4d   :  { %766 = vmatmul.mubr.msk.f32.vlgmr.msra.gmra.mxu0 %vm261_vm2, %v752_v53  ;;  %773 = vmatmul.mubr.msk.f32.vlgmr.msra.gmra.mxu1 %vm261_vm2, %v759_v54  ;;  %v186_v59 = vadd.f32 %v185_v57, %v184_v56  ;;  %v568_v54 = vld [vmem:[#allocation9 + $0x70] sm:$0xff] }
  0x4e   :  { %431 = vmatprep.mubr.f32.mxu0 %v899_v0  ;;  %473 = vmatprep.mubr.f32.mxu1 %v899_v0 }
  0x4f   :  { %187 = vadd.xlane.f32.xlu0 %v186_v59 }
  0x51   :  { %767 = vmatmul.mubr.msk.f32.gmra.mxu0 %vm261_vm2, %v990_v16  ;;  %774 = vmatmul.mubr.msk.f32.gmra.mxu1 %vm261_vm2, %v760_v38 }
  0x52   :  { %437 = vmatprep.mubr.f32.mxu0 %v899_v0  ;;  %479 = vmatprep.mubr.f32.mxu1 %v899_v0 }
  0x53   :  { %263 = vadd.xlane.f32.xlu0 %v262_v61 }
  0x55   :  { %768 = vmatmul.mubr.msk.f32.gmra.mxu0 %vm261_vm2, %v1011_v24  ;;  %775 = vmatmul.mubr.msk.f32.gmra.mxu1 %vm261_vm2, %v761_v62  ;;  %v555_v62 = vld [vmem:[#allocation9 + $0x8] sm:$0xff] }
  0x56   :  { %443 = vmatprep.mubr.f32.mxu0 %v899_v0  ;;  %485 = vmatprep.mubr.f32.mxu1 %v899_v0 }
  0x57   :  { %272 = vadd.xlane.f32.xlu0 %v271_v3 }
  0x59   :  { %769 = vmatmul.mubr.msk.f32.gmra.mxu0 %vm261_vm2, %v755_v63  ;;  %776 = vmatmul.mubr.msk.f32.gmra.mxu1 %vm261_vm2, %v762_v45 }
  0x5a   :  { %449 = vmatprep.mubr.f32.mxu0 %v899_v0  ;;  %491 = vmatprep.mubr.f32.mxu1 %v899_v0 }
  0x5b   :  { %278 = vadd.xlane.f32.xlu0 %v277_v5 }
  0x5d   :  { %770 = vmatmul.mubr.msk.f32.gmra.mxu0 %vm261_vm2, %v1023_v28  ;;  %777 = vmatmul.mubr.msk.f32.gmra.mxu1 %vm261_vm2, %v763_v6 }
  0x5e   :  { %455 = vmatprep.mubr.f32.mxu0 %v899_v0  ;;  %497 = vmatprep.mubr.f32.mxu1 %v899_v0 }
  0x5f   :  { %284 = vadd.xlane.f32.xlu0 %v283_v9 }
  0x61   :  { %771 = vmatmul.mubr.msk.f32.gmra.mxu0 %vm261_vm2, %v757_v4  ;;  %778 = vmatmul.mubr.msk.f32.gmra.mxu1 %vm261_vm2, %v764_v49 }
  0x62   :  { %461 = vmatprep.mubr.f32.mxu0 %v899_v0  ;;  %503 = vmatprep.mubr.f32.mxu1 %v899_v0 }
  0x63   :  { %290 = vadd.xlane.f32.xlu0 %v289_v10 }
  0x65   :  { %772 = vmatmul.mubr.msk.f32.gmra.mxu0 %vm261_vm2, %v1034_v34  ;;  %779 = vmatmul.mubr.msk.f32.gmra.mxu1 %vm261_vm2, %v765_v2  ;;  %v556_v2 = vld [vmem:[#allocation9 + $0x10] sm:$0xff] }
  0x67   :  { %296 = vadd.xlane.f32.xlu0 %v295_v11 }
  0x6b   :  { %303 = vadd.xlane.f32.xlu0 %v302_v8  ;;  %v570_v8 = vld [vmem:[#allocation9 + $0x80] sm:$0xff] }
  0xb0   :  { %v267_v16 = vpop.xlane.xlu1 %266 }
  0xb1   :  { %v306_v31 = vadd.f32 1.0, %v267_v16 }
  0xb4   :  { %v270_v20 = vpop.xlane.xlu1 %269 }
  0xb5   :  { %v307_v34 = vadd.f32 1.0, %v270_v20  ;;  %v571_v20 = vld [vmem:[#allocation9 + $0x88] sm:$0xff] }
  0xb8   :  { %v276_v22 = vpop.xlane.xlu1 %275 }
  0xb9   :  { %v309_v42 = vadd.f32 1.0, %v276_v22 }
  0xbc   :  { %v282_v24 = vpop.xlane.xlu1 %281 }
  0xbd   :  { %v311_v60 = vadd.f32 1.0, %v282_v24 }
  0xc0   :  { %v288_v28 = vpop.xlane.xlu1 %287 }
  0xc1   :  { %v313_v29 = vadd.f32 1.0, %v288_v28  ;;  %v558_v28 = vld [vmem:[#allocation9 + $0x20] sm:$0xff] }
  0xc4   :  { %v294_v33 = vpop.xlane.xlu1 %293 }
  0xc5   :  { %v315_v35 = vadd.f32 1.0, %v294_v33 }
  0xc8   :  { %v300_v40 = vpop.xlane.xlu1 %299 }
  0xc9   :  { %v317_v44 = vadd.f32 1.0, %v300_v40  ;;  %v573_v40 = vld [vmem:[#allocation9 + $0x98] sm:$0xff] }
  0xd8   :  { %v188_v12 = vpop.xlane.xlu0 %187 }
  0xd9   :  { %v189_v13 = vrot.slane %v188_v12, 4 }
  0xdb   :  { %v190_v14 = vadd.f32 %v189_v13, %v188_v12 }
  0xdc   :  { %v264_v18 = vpop.xlane.xlu0 %263 }
  0xdd   :  { %v191_v15 = vrot.slane %v190_v14, 2  ;;  %v305_v26 = vadd.f32 1.0, %v264_v18 }
  0xdf   :  { %v192_v17 = vadd.f32 %v191_v15, %v190_v14  ;;  %799 = vrcp.f32 %v305_v26 }
  0xe0   :  { %v273_v21 = vpop.xlane.xlu0 %272 }
  0xe1   :  { %v193_v0 = vrot.slane %v192_v17, 1  ;;  %v308_v37 = vadd.f32 1.0, %v273_v21 }
  0xe3   :  { %v194_v19 = vadd.f32 %v193_v0, %v192_v17  ;;  %v557_v0 = vld [vmem:[#allocation9 + $0x18] sm:$0xff] }
  0xe4   :  { %v279_v23 = vpop.xlane.xlu0 %278 }
  0xe5   :  { %790 = vpush %v194_v19  ;;  %v310_v49 = vadd.f32 1.0, %v279_v23 }
  0xe8   :  { %v285_v25 = vpop.xlane.xlu0 %284 }
  0xe9   :  { %v312_v27 = vadd.f32 1.0, %v285_v25 }
  0xeb   :  { %801 = vrcp.f32 %v312_v27 }
  0xec   :  { %v291_v30 = vpop.xlane.xlu0 %290  ;;  %803 = vrcp.f32 %v313_v29  ;;  %v800_v39 = vpop.eup %799 }
  0xed   :  { %v314_v32 = vadd.f32 1.0, %v291_v30  ;;  %805 = vrcp.f32 %v306_v31  ;;  %v540_v45 = vmul.f32 %v800_v39, %v1123_v43  ;;  %v572_v30 = vld [vmem:[#allocation9 + $0x90] sm:$0xff] }
  0xef   :  { %807 = vrcp.f32 %v314_v32 }
  0xf0   :  { %v297_v36 = vpop.xlane.xlu0 %296  ;;  %809 = vrcp.f32 %v307_v34 }
  0xf1   :  { %811 = vrcp.f32 %v315_v35  ;;  %v316_v38 = vadd.f32 1.0, %v297_v36 }
  0xf2   :  { %813 = vrcp.f32 %v308_v37 }
  0xf3   :  { %815 = vrcp.f32 %v316_v38  ;;  %v559_v38 = vld [vmem:[#allocation9 + $0x28] sm:$0xff] }
  0xf4   :  { %v304_v47 = vpop.xlane.xlu0 %303  ;;  %817 = vrcp.f32 %v309_v42 }
  0xf5   :  { %819 = vrcp.f32 %v317_v44  ;;  %v318_v55 = vadd.f32 1.0, %v304_v47 }
  0xf6   :  { %821 = vrcp.f32 %v310_v49  ;;  %v560_v49 = vld [vmem:[#allocation9 + $0x30] sm:$0xff] }
  0xf7   :  { %823 = vrcp.f32 %v318_v55 }
  0xf8   :  { %v802_v41 = vpop.eup %801  ;;  %825 = vrcp.f32 %v311_v60 }
  0xf9   :  { %v547_v46 = vmul.f32 %v802_v41, %v1123_v43  ;;  %v804_v48 = vpop.eup %803 }
  0xfa   :  { %v806_v50 = vpop.eup %805  ;;  %v548_v59 = vmul.f32 %v804_v48, %v1123_v43 }
  0xfb   :  { %v541_v3 = vmul.f32 %v806_v50, %v1123_v43 }
  0xfc   :  { %v808_v56 = vpop.eup %807 }
  0xfd   :  { %v810_v4 = vpop.eup %809  ;;  %v549_v12 = vmul.f32 %v808_v56, %v1123_v43 }
  0xfe   :  { %v812_v13 = vpop.eup %811  ;;  %v542_v21 = vmul.f32 %v810_v4, %v1123_v43 }
  0xff   :  { %v814_v22 = vpop.eup %813  ;;  %v550_v31 = vmul.f32 %v812_v13, %v1123_v43 }
 0x100   :  { %v816_v32 = vpop.eup %815  ;;  %v543_v41 = vmul.f32 %v814_v22, %v1123_v43 }
 0x101   :  { %v818_v42 = vpop.eup %817 }
 0x10d   :  { %v427_v51 = vpop.f32.mrf.mxu0  ;;  %v469_v53 = vpop.f32.mrf.mxu1 }
 0x10e   :  { %v582_v57 = vmul.f32 %v540_v45, %v427_v51  ;;  %v596_v58 = vmul.f32 %v547_v46, %v469_v53  ;;  %v574_v51 = vld [vmem:[#allocation9 + $0xa0] sm:$0xff]  ;;  %v820_v53 = vpop.eup %819 }
 0x10f   :  { %v429_v61 = vpop.f32.mrf.mxu0  ;;  %v471_v63 = vpop.f32.mrf.mxu1 }
 0x110   :  { %v610_v5 = vsub.f32 %v554_v52, %v582_v57  ;;  %v624_v6 = vsub.f32 %v568_v54, %v596_v58  ;;  %v583_v7 = vmul.f32 %v540_v45, %v429_v61  ;;  %v597_v9 = vmul.f32 %v547_v46, %v471_v63  ;;  %v575_v61 = vld [vmem:[#allocation9 + $0xa8] sm:$0xff]  ;;  %v822_v63 = vpop.eup %821 }
 0x111   :  { %v433_v10 = vpop.f32.mrf.mxu0  ;;  %v475_v11 = vpop.f32.mrf.mxu1  ;;  %v551_v52 = vmul.f32 %v816_v32, %v1123_v43 }
 0x112   :  { %638 = vst [vmem:[#allocation11] sm:$0xff] %v610_v5  ;;  %652 = vst [vmem:[#allocation11 + $0x70] sm:$0xff] %v624_v6  ;;  %v611_v14 = vsub.f32 %v555_v62, %v583_v7  ;;  %v625_v15 = vsub.f32 %v569_v1, %v597_v9  ;;  %v584_v16 = vmul.f32 %v541_v3, %v433_v10  ;;  %v562_v7 = vld [vmem:[#allocation9 + $0x40] sm:$0xff]  ;;  %v576_v10 = vld [vmem:[#allocation9 + $0xb0] sm:$0xff] }
 0x113   :  { %v598_v17 = vmul.f32 %v548_v59, %v475_v11  ;;  %v435_v18 = vpop.f32.mrf.mxu0  ;;  %v477_v19 = vpop.f32.mrf.mxu1  ;;  %v544_v62 = vmul.f32 %v818_v42, %v1123_v43 }
 0x114   :  { %639 = vst [vmem:[#allocation11 + $0x8] sm:$0xff] %v611_v14  ;;  %653 = vst [vmem:[#allocation11 + $0x78] sm:$0xff] %v625_v15  ;;  %v612_v23 = vsub.f32 %v556_v2, %v584_v16  ;;  %v585_v25 = vmul.f32 %v541_v3, %v435_v18  ;;  %v599_v26 = vmul.f32 %v548_v59, %v477_v19  ;;  %v561_v59 = vld [vmem:[#allocation9 + $0x38] sm:$0xff]  ;;  %v824_v11 = vpop.eup %823  ;;  %v563_v16 = vld [vmem:[#allocation9 + $0x48] sm:$0xff] }
 0x115   :  { %v626_v24 = vsub.f32 %v570_v8, %v598_v17  ;;  %v439_v27 = vpop.f32.mrf.mxu0  ;;  %v481_v29 = vpop.f32.mrf.mxu1  ;;  %v552_v2 = vmul.f32 %v820_v53, %v1123_v43  ;;  %v577_v18 = vld [vmem:[#allocation9 + $0xb8] sm:$0xff] }
 0x116   :  { %640 = vst [vmem:[#allocation11 + $0x10] sm:$0xff] %v612_v23  ;;  %v613_v33 = vsub.f32 %v557_v0, %v585_v25  ;;  %v627_v34 = vsub.f32 %v571_v20, %v599_v26  ;;  %v586_v35 = vmul.f32 %v542_v21, %v439_v27  ;;  %v600_v36 = vmul.f32 %v549_v12, %v481_v29  ;;  %s791_s4 = spop %790  ;;  %v826_v19 = vpop.eup %825  ;;  %v564_v25 = vld [vmem:[#allocation9 + $0x50] sm:$0xff]  ;;  %v578_v27 = vld [vmem:[#allocation9 + $0xc0] sm:$0xff] }
 0x117   :  { %654 = vst [vmem:[#allocation11 + $0x80] sm:$0xff] %v626_v24  ;;  %v441_v37 = vpop.f32.mrf.mxu0  ;;  %v483_v39 = vpop.f32.mrf.mxu1  ;;  %s196_s26 = smul.f32 0.0625, %s791_s4  ;;  %v545_v0 = vmul.f32 %v822_v63, %v1123_v43 }
 0x118   :  { %641 = vst [vmem:[#allocation11 + $0x18] sm:$0xff] %v613_v33  ;;  %655 = vst [vmem:[#allocation11 + $0x88] sm:$0xff] %v627_v34  ;;  %v614_v44 = vsub.f32 %v558_v28, %v586_v35  ;;  %v628_v45 = vsub.f32 %v572_v30, %v600_v36  ;;  %v587_v46 = vmul.f32 %v542_v21, %v441_v37  ;;  %v565_v34 = vld [vmem:[#allocation9 + $0x58] sm:$0xff]  ;;  %v579_v36 = vld [vmem:[#allocation9 + $0xc8] sm:$0xff] }
 0x119   :  { %v601_v47 = vmul.f32 %v549_v12, %v483_v39  ;;  %v445_v48 = vpop.f32.mrf.mxu0  ;;  %v487_v50 = vpop.f32.mrf.mxu1  ;;  %198 = sst [smem:[#allocation10]] %s196_s26  ;;  %v553_v28 = vmul.f32 %v824_v11, %v1123_v43  ;;  %v546_v37 = vmul.f32 %v826_v19, %v1123_v43  ;;  %v581_v43 = vld [vmem:[#allocation9 + $0xd8] sm:$0x7] }
 0x11a   :  { %642 = vst [vmem:[#allocation11 + $0x20] sm:$0xff] %v614_v44  ;;  %656 = vst [vmem:[#allocation11 + $0x90] sm:$0xff] %v628_v45  ;;  %v615_v54 = vsub.f32 %v559_v38, %v587_v46  ;;  %v588_v56 = vmul.f32 %v543_v41, %v445_v48  ;;  %v602_v57 = vmul.f32 %v550_v31, %v487_v50  ;;  %673 = dma.smem_to_hbm %s900_s27, 16, %s1153_s5, [#allocation7]   ;;  %v566_v44 = vld [vmem:[#allocation9 + $0x60] sm:$0xff] }
 0x11b   :  { %v629_v55 = vsub.f32 %v573_v40, %v601_v47  ;;  %v447_v58 = vpop.f32.mrf.mxu0  ;;  %v489_v60 = vpop.f32.mrf.mxu1  ;;  %v580_v46 = vld [vmem:[#allocation9 + $0xd0] sm:$0x7]  ;;  %s901_s5 = smov [#allocation11]  }
 0x11c   :  { %643 = vst [vmem:[#allocation11 + $0x28] sm:$0xff] %v615_v54  ;;  %v616_v1 = vsub.f32 %v560_v49, %v588_v56  ;;  %v630_v3 = vsub.f32 %v574_v51, %v602_v57  ;;  %v589_v4 = vmul.f32 %v543_v41, %v447_v58  ;;  %v603_v5 = vmul.f32 %v550_v31, %v489_v60  ;;  %s679_s30 = sshll.u32 %s901_s5, 4  ;;  %s680_s30 = int_to_ptr.vmem [resolvable:$true] %s679_s30 }
 0x11d   :  { %657 = vst [vmem:[#allocation11 + $0x98] sm:$0xff] %v629_v55  ;;  %v451_v6 = vpop.f32.mrf.mxu0  ;;  %v493_v9 = vpop.f32.mrf.mxu1  ;;  %s867_s7 = scalar_lea.vmem %s680_s30, 3584  ;;  %p872_p11 = scmp.lt.s32.totalorder %s680_s30, %s680_s30 }
 0x11e   :  { %644 = vst [vmem:[#allocation11 + $0x30] sm:$0xff] %v616_v1  ;;  %658 = vst [vmem:[#allocation11 + $0xa0] sm:$0xff] %v630_v3  ;;  %v617_v8 = vsub.f32 %v561_v59, %v589_v4  ;;  %v631_v12 = vsub.f32 %v575_v61, %v603_v5  ;;  %v590_v13 = vmul.f32 %v544_v62, %v451_v6  ;;  %p868_p10 = scmp.ne.s32.totalorder %s680_s30, %s867_s7  ;;  %p873_p12 = scmp.lt.s32.totalorder %s867_s7, %s867_s7 }
 0x11f   :  { %v604_v14 = vmul.f32 %v551_v52, %v493_v9  ;;  %v453_v15 = vpop.f32.mrf.mxu0  ;;  %v495_v17 = vpop.f32.mrf.mxu1 }
 0x120   :  { %645 = vst [vmem:[#allocation11 + $0x38] sm:$0xff] %v617_v8  ;;  %659 = vst [vmem:[#allocation11 + $0xa8] sm:$0xff] %v631_v12  ;;  %v618_v20 = vsub.f32 %v562_v7, %v590_v13  ;;  %v591_v22 = vmul.f32 %v544_v62, %v453_v15  ;;  %v605_v23 = vmul.f32 %v551_v52, %v495_v17  ;;  %v567_v52 = vld [vmem:[#allocation9 + $0x68] sm:$0xff]  ;;  %p874_p13 = por %p873_p12, %p872_p11 }
 0x121   :  { %v632_v21 = vsub.f32 %v576_v10, %v604_v14  ;;  %v457_v24 = vpop.f32.mrf.mxu0  ;;  %v499_v26 = vpop.f32.mrf.mxu1 }
 0x122   :  { %646 = vst [vmem:[#allocation11 + $0x40] sm:$0xff] %v618_v20  ;;  %v619_v29 = vsub.f32 %v563_v16, %v591_v22  ;;  %v633_v30 = vsub.f32 %v577_v18, %v605_v23  ;;  %v592_v31 = vmul.f32 %v545_v0, %v457_v24  ;;  %v606_v32 = vmul.f32 %v552_v2, %v499_v26  ;;  %p875_p0 = pnand %p874_p13, %p868_p10 }
 0x123   :  { %660 = vst [vmem:[#allocation11 + $0xb0] sm:$0xff] %v632_v21  ;;  %v459_v33 = vpop.f32.mrf.mxu0  ;;  %v501_v35 = vpop.f32.mrf.mxu1 }
 0x124   :  { %647 = vst [vmem:[#allocation11 + $0x48] sm:$0xff] %v619_v29  ;;  %661 = vst [vmem:[#allocation11 + $0xb8] sm:$0xff] %v633_v30  ;;  %v620_v38 = vsub.f32 %v564_v25, %v592_v31  ;;  %v634_v39 = vsub.f32 %v578_v27, %v606_v32  ;;  %v593_v40 = vmul.f32 %v545_v0, %v459_v33 }
 0x125   :  { %v607_v41 = vmul.f32 %v552_v2, %v501_v35  ;;  %v463_v42 = vpop.f32.mrf.mxu0  ;;  %v505_v45 = vpop.f32.mrf.mxu1 }
 0x126   :  { %648 = vst [vmem:[#allocation11 + $0x50] sm:$0xff] %v620_v38  ;;  %662 = vst [vmem:[#allocation11 + $0xc0] sm:$0xff] %v634_v39  ;;  %v621_v47 = vsub.f32 %v565_v34, %v593_v40  ;;  %v594_v49 = vmul.f32 %v546_v37, %v463_v42  ;;  %v608_v50 = vmul.f32 %v553_v28, %v505_v45 }
 0x127   :  { %v635_v48 = vsub.f32 %v579_v36, %v607_v41  ;;  %v465_v51 = vpop.f32.mrf.mxu0  ;;  %v507_v53 = vpop.f32.mrf.mxu1 }
 0x128   :  { %649 = vst [vmem:[#allocation11 + $0x58] sm:$0xff] %v621_v47  ;;  %v622_v54 = vsub.f32 %v566_v44, %v594_v49  ;;  %v636_v55 = vsub.f32 %v580_v46, %v608_v50  ;;  %v595_v56 = vmul.f32 %v546_v37, %v465_v51  ;;  %v609_v57 = vmul.f32 %v553_v28, %v507_v53 }
 0x129   :  { %663 = vst [vmem:[#allocation11 + $0xc8] sm:$0xff] %v635_v48 }
 0x12a   :  { %650 = vst [vmem:[#allocation11 + $0x60] sm:$0xff] %v622_v54  ;;  %664 = vst [vmem:[#allocation11 + $0xd0] sm:$0x7] %v636_v55  ;;  %v623_v58 = vsub.f32 %v567_v52, %v595_v56  ;;  %v637_v59 = vsub.f32 %v581_v43, %v609_v57 }
 0x12c   :  { %651 = vst [vmem:[#allocation11 + $0x68] sm:$0xff] %v623_v58  ;;  %665 = vst [vmem:[#allocation11 + $0xd8] sm:$0x7] %v637_v59 }
 0x12d   :  { %878 = shalt.err (!%p875_p0)
}
 0x12e   :  { %685 = dma.vmem_to_hbm [thread:$0]  %s680_s30, 3584, %s1154_s6, [#allocation6], %s897_s0, %s897_s0, %s898_s29  }
 0x12f   :  { %891 = dma.done.wait [#allocation7], 16  }
 0x130   :  { %892 = vsyncadd [#allocation7], 4294967280 }
 0x131   :  { %893 = dma.done.wait [#allocation6], 3584  }
 0x132   :  { %894 = vsyncadd [#allocation6], 4294963712 }
 0x133   :  { %692 = sfence }
 0x134   :  { %693 = vsyncpa [#allocation5], 1 }
 0x135   :  { %694 = vsyncpa [#allocation6], 1 }
 0x136   :  { %695 = vsyncpa [#allocation7], 1 }
 0x137   :  { %696 = vsyncpa [#allocation8], 1 }

</bundles_post_ra>
